<compile_context>
chip_gen: v7x
topology: tpu7x:2x2x1
jax: 0.10.0
libtpu: 0.0.40
codegen_flags: <defaults>
</compile_context>

<pallas_src>
import jax
import jax.numpy as jnp
from jax.experimental import pallas as pl
from jax.experimental.pallas import tpu as pltpu

_LANE = 128                       # lane-dense last dim (full, unmasked vector stores)
_TILE_BYTES = 2 * 1024 * 1024     # ~2 MiB per block: amortizes ~0.35 us/grid-step overhead
_MIN_PALLAS_ELEMENTS = 256 * 1024 # below this, XLA sigmoid is strictly faster


def _sigmoid_kernel(x_ref, o_ref):
    # Elementwise sigmoid on one VMEM tile. tanh form = single EUP push + FMA (no VALU recip).
    x = x_ref[...].astype(jnp.float32)
    o_ref[...] = (0.5 * (jnp.tanh(0.5 * x) + 1.0)).astype(o_ref.dtype)


def _round_up(v: int, m: int) -> int:
    return ((v + m - 1) // m) * m


def _pallas_sigmoid_2d(x2d: jax.Array) -> jax.Array:
    """Tiled sigmoid over a lane-dense (rows, 128) slab."""
    rows, lanes = x2d.shape
    itemsize = jnp.dtype(x2d.dtype).itemsize

    # Block-row cap keeping ~_TILE_BYTES per tile in the storage dtype
    # (f32 -> 4096 rows = 2 MiB; bf16 -> 8192 rows = 2 MiB).
    cap = max(8, _round_up(_TILE_BYTES // (lanes * itemsize), 8))

    if rows <= 8:
        # Tiny slab: single full-dim block (block shape equal to full array dims is legal).
        block_rows = rows
    else:
        # Aim for >=2 grid steps so v7x's two TensorCores both get work; cap at ~2 MiB tiles.
        target = _round_up(pl.cdiv(rows, 2), 8)
        block_rows = min(cap, target)

    grid = (pl.cdiv(rows, block_rows),)   # Pallas masks the ragged edge block

    n = rows * lanes
    cost = pl.CostEstimate(
        flops=n, transcendentals=n, bytes_accessed=2 * n * itemsize)

    return pl.pallas_call(
        _sigmoid_kernel,
        out_shape=jax.ShapeDtypeStruct((rows, lanes), x2d.dtype),
        grid=grid,
        in_specs=[pl.BlockSpec((block_rows, lanes), lambda i: (i, 0))],
        out_specs=pl.BlockSpec((block_rows, lanes), lambda i: (i, 0)),
        compiler_params=pltpu.CompilerParams(
            dimension_semantics=("parallel",),  # v7x: shard grid across both TCs
        ),
        cost_estimate=cost,
    )(x2d)


def orbit_probs(logits: jax.Array, *, min_pallas_elements: int = _MIN_PALLAS_ELEMENTS) -> jax.Array:
    """probs() of OrbitBaseLogits: elementwise sigmoid over the logits from forward().

    Accepts any shape/float dtype.  Small inputs (including the production (4,128) shape)
    use plain jax.nn.sigmoid; larger inputs run the tiled Pallas kernel.  Aligned sizes
    (n % 128 == 0) take a zero-copy reshape path; only unaligned sizes pay a pad + slice.
    """
    orig_shape = logits.shape
    orig_dtype = logits.dtype
    n = logits.size

    if n == 0:
        return logits

    if n < min_pallas_elements:
        # Tiny-input fallback: dispatch/pipeline overhead would dominate, and the XLA
        # sigmoid fuses into adjacent ops.
        return jax.nn.sigmoid(logits.astype(jnp.float32)).astype(orig_dtype)

    flat = logits.reshape(-1)

    if n % _LANE == 0:
        # Fast path: lane-dense reshape, no pad, no post-slice.
        out2d = _pallas_sigmoid_2d(flat.reshape(n // _LANE, _LANE))
        return out2d.reshape(orig_shape)

    # Unaligned path: minimal pad to a lane multiple (rows NOT rounded to block multiples).
    rows = pl.cdiv(n, _LANE)
    padded = rows * _LANE
    flat = jnp.pad(flat, (0, padded - n))
    out2d = _pallas_sigmoid_2d(flat.reshape(rows, _LANE))
    return out2d.reshape(-1)[:n].reshape(orig_shape)


if __name__ == "__main__":
    # TODO(synk): base-class forward() raises NotImplementedError; a concrete subclass's
    # logits parameter is synthesized here instead.
    key = jax.random.PRNGKey(0)
    k1, k2, k3 = jax.random.split(key, 3)

    # 1) Production-like shape: [orbits, channels] = [4, 128], f32 (takes the XLA fallback).
    logits_small = jax.random.normal(k1, (4, 128), dtype=jnp.float32)
    probs_small = jax.block_until_ready(orbit_probs(logits_small))
    ref_small = jax.nn.sigmoid(logits_small)
    assert probs_small.shape == logits_small.shape
    assert jnp.allclose(probs_small, ref_small, atol=1e-5, rtol=1e-5), "small f32 mismatch"

    # 1b) Same production shape forced through the Pallas kernel (single full-dim block).
    probs_small_pk = jax.block_until_ready(orbit_probs(logits_small, min_pallas_elements=0))
    assert jnp.allclose(probs_small_pk, ref_small, atol=1e-5, rtol=1e-5), "small pallas mismatch"

    # 2) Aligned f32 case above the default threshold: exercises the real tiled Pallas path
    #    (no pad, no slice, >=2 grid steps).
    logits_big = jax.random.normal(k2, (512, 1024), dtype=jnp.float32)
    probs_big = jax.block_until_ready(orbit_probs(logits_big))
    ref_big = jax.nn.sigmoid(logits_big)
    assert probs_big.shape == logits_big.shape
    assert jnp.allclose(probs_big, ref_big, atol=1e-5, rtol=1e-5), "big f32 mismatch"

    # 3) bf16, genuinely unaligned shape, forced through the Pallas pad path + edge masking.
    logits_bf16 = jax.random.normal(k3, (13, 160), dtype=jnp.bfloat16)
    probs_bf16 = jax.block_until_ready(orbit_probs(logits_bf16, min_pallas_elements=0))
    ref_bf16 = jax.nn.sigmoid(logits_bf16.astype(jnp.float32)).astype(jnp.bfloat16)
    assert probs_bf16.shape == logits_bf16.shape
    assert jnp.allclose(
        probs_bf16.astype(jnp.float32), ref_bf16.astype(jnp.float32), atol=1e-2, rtol=1e-2
    ), "bf16 mismatch"

    print("KERNEL_OK")
</pallas_src>

<mosaic_0001>
module attributes {stable_mosaic.version = 11 : i64} {
  func.func @_sigmoid_kernel(%arg0: i32, %arg1: memref<4x128xf32, #tpu.memory_space<vmem>>, %arg2: memref<4x128xf32, #tpu.memory_space<vmem>>) attributes {dimension_semantics = [#tpu.dimension_semantics<parallel>], iteration_bounds = array<i64: 1>, scalar_prefetch = 0 : i64, scratch_operands = 0 : i64, tpu.core_type = #tpu.core_type<tc>, window_params = [{transform_indices = @transform_0, window_bounds = array<i64: 4, 128>}, {transform_indices = @transform_1, window_bounds = array<i64: 4, 128>}]} {
    %c0 = arith.constant 0 : index
    %c0_0 = arith.constant 0 : index
    %0 = vector.load %arg1[%c0, %c0_0] : memref<4x128xf32, #tpu.memory_space<vmem>>, vector<4x128xf32>
    %cst = arith.constant 5.000000e-01 : f32
    %1 = vector.broadcast %cst : f32 to vector<4x128xf32>
    %2 = arith.mulf %1, %0 : vector<4x128xf32>
    %3 = math.tanh %2 : vector<4x128xf32>
    %cst_1 = arith.constant 1.000000e+00 : f32
    %4 = vector.broadcast %cst_1 : f32 to vector<4x128xf32>
    %5 = arith.addf %3, %4 : vector<4x128xf32>
    %cst_2 = arith.constant 5.000000e-01 : f32
    %6 = vector.broadcast %cst_2 : f32 to vector<4x128xf32>
    %7 = arith.mulf %6, %5 : vector<4x128xf32>
    %c0_3 = arith.constant 0 : index
    %c0_4 = arith.constant 0 : index
    %8 = vector.load %arg2[%c0_3, %c0_4] : memref<4x128xf32, #tpu.memory_space<vmem>>, vector<4x128xf32>
    tpu.vector_store %arg2[%c0_3, %c0_4], %7 {strides = array<i32>} : memref<4x128xf32, #tpu.memory_space<vmem>>, vector<4x128xf32>,
    return
  }
  func.func @transform_0(%arg0: i32) -> (i32, i32) {
    %c0_i32 = arith.constant 0 : i32
    %c0_i32_0 = arith.constant 0 : i32
    return %arg0, %c0_i32 : i32, i32
  }
  func.func @transform_1(%arg0: i32) -> (i32, i32) {
    %c0_i32 = arith.constant 0 : i32
    %c0_i32_0 = arith.constant 0 : i32
    return %arg0, %c0_i32 : i32, i32
  }
}

</mosaic_0001>

<bundles_post_ra>
// kernel: tpu_custom_call.1
= control target key start
LH: loop header
LB: loop body
LE: loop exit
PB: predicated region body
PF: predicated region fallthrough
CT: control target
= control target key end

     0   :  { %6 = vsyncpa [#allocation3], 0  ;;  %s130_s0 = inlined_call_operand.hbm [shape: f32[4,128], index: 0, kind: input, shape index: {}]   ;;  %s131_s1 = inlined_call_operand.hbm [shape: f32[4,128], index: 1, kind: output, shape index: {}]  }
   0x1   :  { %7 = vsyncpa [#allocation4], 0  ;;  %s94_s6 = smov [#allocation2]   ;;  %s46_s10 = scalar_lea.hbm %s130_s0, 64 }
   0x2   :  { %s14_s7 = sshll.u32 %s94_s6, 4  ;;  %p47_p0 = scmp.ne.s32.totalorder %s130_s0, %s46_s10  ;;  %s15_s7 = int_to_ptr.vmem [resolvable:$true] %s14_s7 }
   0x3   :  { %p50_p1 = scmp.lt.u32.totalorder %s46_s10, %s130_s0 }
   0x5   :  { %p52_p2 = pnand %p50_p1, %p47_p0 }
   0x7   :  { %55 = shalt.err (!%p52_p2)
}
   0x8   :  { %s56_s15 = scalar_lea.vmem %s15_s7, 64  ;;  %p61_p4 = scmp.lt.s32.totalorder %s15_s7, %s15_s7 }
   0x9   :  { %p57_p3 = scmp.ne.s32.totalorder %s15_s7, %s56_s15  ;;  %p62_p5 = scmp.lt.s32.totalorder %s56_s15, %s56_s15 }
   0xb   :  { %p63_p6 = por %p62_p5, %p61_p4 }
   0xd   :  { %p64_p7 = pnand %p63_p6, %p57_p3 }
   0xf   :  { %67 = shalt.err (!%p64_p7)
}
  0x10   :  { %17 = dma.hbm_to_vmem [thread:$0]  %s130_s0, 64, %s15_s7, [#allocation3]  }
  0x11   :  { %90 = dma.done.wait [#allocation3], 64  }
  0x12   :  { %91 = vsyncadd [#allocation3], 4294967232  ;;  %v21_v0 = vld [vmem:[#allocation2] sm:$0xf]  ;;  %s95_s18 = smov [#allocation5]  }
  0x13   :  { %v22_v1 = vmul.f32 0.5, %v21_v0  ;;  %s33_s19 = sshll.u32 %s95_s18, 4  ;;  %s34_s19 = int_to_ptr.vmem [resolvable:$true] %s33_s19 }
  0x14   :  { %s68_s20 = scalar_lea.vmem %s34_s19, 64  ;;  %p73_p9 = scmp.lt.s32.totalorder %s34_s19, %s34_s19 }
  0x15   :  { %44 = vtanh.f32 %v22_v1  ;;  %p69_p8 = scmp.ne.s32.totalorder %s34_s19, %s68_s20  ;;  %p74_p10 = scmp.lt.s32.totalorder %s68_s20, %s68_s20 }
  0x17   :  { %p75_p11 = por %p74_p10, %p73_p9 }
  0x19   :  { %p76_p12 = pnand %p75_p11, %p69_p8 }
  0x1f   :  { %v45_v2 = vpop.eup %44 }
  0x20   :  { %v24_v3 = vadd.f32 1.0, %v45_v2 }
  0x22   :  { %v25_v4 = vmul.f32 0.5, %v24_v3 }
  0x24   :  { %26 = vst [vmem:[#allocation5] sm:$0xf] %v25_v4 }
  0x25   :  { %79 = shalt.err (!%p76_p12)
}
  0x26   :  { %s80_s22 = scalar_lea.hbm %s131_s1, 64 }
  0x27   :  { %p81_p13 = scmp.ne.s32.totalorder %s131_s1, %s80_s22  ;;  %p84_p0 = scmp.lt.u32.totalorder %s80_s22, %s131_s1 }
  0x29   :  { %p86_p1 = pnand %p84_p0, %p81_p13 }
  0x2b   :  { %89 = shalt.err (!%p86_p1)
}
  0x2c   :  { %36 = dma.vmem_to_hbm [thread:$0]  %s34_s19, 64, %s131_s1, [#allocation4]  }
  0x2d   :  { %92 = dma.done.wait [#allocation4], 64  }
  0x2e   :  { %93 = vsyncadd [#allocation4], 4294967232 }
  0x2f   :  { %40 = vsyncpa [#allocation3], 1 }
  0x30   :  { %41 = vsyncpa [#allocation4], 1 }

</bundles_post_ra>
